<compile_context>
chip_gen: v5e
topology: v5e:2x2
jax: 0.10.0
libtpu: 0.0.40
codegen_flags: <defaults>
</compile_context>

<pallas_src>
import functools

import jax
import jax.numpy as jnp
from jax.experimental import pallas as pl
from jax.experimental.pallas import tpu as pltpu


def _round_up(n, m):
    return ((n + m - 1) // m) * m


def vib_forward_kernel(
    x_ref, eps_ref,
    w1_ref, b1_ref,
    wh_ref, bh_ref,
    wd_ref, bd_ref,
    out_ref,
    *, n_classes, latent,
):
    # ---- encoder trunk: Linear + ReLU (bf16 MXU inputs, f32 accumulation) ----
    h = jnp.dot(x_ref[...], w1_ref[...],
                preferred_element_type=jnp.float32) + b1_ref[...]
    h = jnp.maximum(h, 0.0)

    # ---- fused encoder heads -> [mu | logvar]  (one matmul) ------------------
    heads = jnp.dot(h.astype(jnp.bfloat16), wh_ref[...],
                    preferred_element_type=jnp.float32) + bh_ref[...]
    mu = heads[:, :latent]
    logvar = heads[:, latent:]

    # ---- reparameterize: z = mu + eps * exp(0.5 * logvar) --------------------
    z = mu + eps_ref[...] * jnp.exp(0.5 * logvar)

    # ---- fused decoders -> [class logits | recon logits]  (one matmul) -------
    dec = jnp.dot(z.astype(jnp.bfloat16), wd_ref[...],
                  preferred_element_type=jnp.float32) + bd_ref[...]
    # sigmoid only on the reconstruction lanes (columns >= n_classes)
    col = jax.lax.broadcasted_iota(jnp.int32, dec.shape, 1)
    dec = jnp.where(col >= n_classes, jax.nn.sigmoid(dec), dec)

    # ---- single lane-dense output slab: [pred | recon | mu | logvar | pad] ---
    tb = out_ref.shape[0]
    pad = out_ref.shape[1] - dec.shape[1] - heads.shape[1]
    pieces = [dec, heads]
    if pad > 0:
        pieces.append(jnp.zeros((tb, pad), jnp.float32))
    out_ref[...] = jnp.concatenate(pieces, axis=-1)


def vib_forward(x, eps, params, *, block_b=256):
    """Full VIB forward pass in one Pallas kernel.

    x:   (B, D_in) float32
    eps: (B, L)    float32 noise ~ N(0,1)
    Returns (pred, recon, mu, logvar) in float32.
    """
    B, D_in = x.shape
    L = params["wmu"].shape[1]
    C = params["wc"].shape[1]

    # Fuse the two encoder heads and the two decoders into single matmuls.
    w_heads = jnp.concatenate([params["wmu"], params["wlv"]], axis=1)   # (H, 2L)
    b_heads = jnp.concatenate([params["bmu"], params["blv"]], axis=1)   # (1, 2L)
    w_dec = jnp.concatenate([params["wc"], params["wr"]], axis=1)       # (L, C+D_in)
    b_dec = jnp.concatenate([params["bc"], params["br"]], axis=1)       # (1, C+D_in)

    # bf16 matmul operands (halves weight / activation DMA, full MXU rate on
    # v6e / v7x); biases and all elementwise math stay in f32.
    x_bf = x.astype(jnp.bfloat16)
    w1 = params["w1"].astype(jnp.bfloat16)
    w_heads = w_heads.astype(jnp.bfloat16)
    w_dec = w_dec.astype(jnp.bfloat16)
    b1 = params["b1"].astype(jnp.float32)
    b_heads = b_heads.astype(jnp.float32)
    b_dec = b_dec.astype(jnp.float32)
    eps = eps.astype(jnp.float32)

    # Batch tiling: tile multiple of 16 (bf16 sublane packing); pad B if needed.
    tb = min(block_b, _round_up(B, 16))
    B_pad = _round_up(B, tb)
    if B_pad != B:
        x_bf = jnp.pad(x_bf, ((0, B_pad - B), (0, 0)))
        eps = jnp.pad(eps, ((0, B_pad - B), (0, 0)))
    grid = (B_pad // tb,)

    out_width = C + D_in + 2 * L
    out_pad = _round_up(out_width, 128)

    kernel = functools.partial(vib_forward_kernel, n_classes=C, latent=L)

    def batched(width):
        return pl.BlockSpec((tb, width), lambda i: (i, 0))

    def resident(arr):
        # Constant block index -> weight/bias stays VMEM-resident across grid.
        return pl.BlockSpec(arr.shape, lambda i: (0, 0))

    slab = pl.pallas_call(
        kernel,
        out_shape=jax.ShapeDtypeStruct((B_pad, out_pad), jnp.float32),
        grid=grid,
        in_specs=[
            batched(D_in),                 # x
            batched(L),                    # eps
            resident(w1), resident(b1),
            resident(w_heads), resident(b_heads),
            resident(w_dec), resident(b_dec),
        ],
        out_specs=pl.BlockSpec((tb, out_pad), lambda i: (i, 0)),
        compiler_params=pltpu.CompilerParams(
            dimension_semantics=("parallel",)),
    )(x_bf, eps, w1, b1, w_heads, b_heads, w_dec, b_dec)

    pred = slab[:B, :C]
    recon = slab[:B, C:C + D_in]
    mu = slab[:B, C + D_in:C + D_in + L]
    logvar = slab[:B, C + D_in + L:C + D_in + 2 * L]
    return pred, recon, mu, logvar


def init_params(key, d_in, hidden, latent, n_classes):
    """Deterministic parameter init (scaling like torch.nn.Linear default)."""
    ks = jax.random.split(key, 5)

    def linear(k, fan_in, fan_out):
        scale = 1.0 / jnp.sqrt(jnp.float32(fan_in))
        w = jax.random.uniform(k, (fan_in, fan_out), jnp.float32, -scale, scale)
        b = jnp.zeros((1, fan_out), jnp.float32)
        return w, b

    w1, b1 = linear(ks[0], d_in, hidden)
    wmu, bmu = linear(ks[1], hidden, latent)
    wlv, blv = linear(ks[2], hidden, latent)
    wc, bc = linear(ks[3], latent, n_classes)
    wr, br = linear(ks[4], latent, d_in)
    return dict(w1=w1, b1=b1, wmu=wmu, bmu=bmu, wlv=wlv, blv=blv,
                wc=wc, bc=bc, wr=wr, br=br)


def vib_forward_ref_f32(x, eps, p):
    """Pure-JAX f32 reference of the original module semantics."""
    h = jnp.maximum(x @ p["w1"] + p["b1"], 0.0)
    mu = h @ p["wmu"] + p["bmu"]
    logvar = h @ p["wlv"] + p["blv"]
    z = mu + eps * jnp.exp(0.5 * logvar)
    pred = z @ p["wc"] + p["bc"]
    recon = jax.nn.sigmoid(z @ p["wr"] + p["br"])
    return pred, recon, mu, logvar


def vib_forward_ref_bf16(x, eps, p):
    """Pure-JAX reference mirroring the kernel's bf16-matmul / f32-accumulate math."""
    bf = jnp.bfloat16

    def dot(a, w):
        return jnp.dot(a.astype(bf), w.astype(bf),
                       preferred_element_type=jnp.float32)

    h = jnp.maximum(dot(x, p["w1"]) + p["b1"], 0.0)
    mu = dot(h, p["wmu"]) + p["bmu"]
    logvar = dot(h, p["wlv"]) + p["blv"]
    z = mu + eps * jnp.exp(0.5 * logvar)
    pred = dot(z, p["wc"]) + p["bc"]
    recon = jax.nn.sigmoid(dot(z, p["wr"]) + p["br"])
    return pred, recon, mu, logvar


if __name__ == "__main__":
    B, D_IN, HIDDEN, LATENT, N_CLASSES = 8, 32, 64, 16, 8

    key = jax.random.PRNGKey(0)
    k_x, k_eps, k_p = jax.random.split(key, 3)

    x = jax.random.normal(k_x, (B, D_IN), jnp.float32)
    # TODO(synk): eps is sampled outside (jax.random) instead of torch.randn_like
    # inside the module, for deterministic reproducibility.
    eps = jax.random.normal(k_eps, (B, LATENT), jnp.float32)
    params = init_params(k_p, D_IN, HIDDEN, LATENT, N_CLASSES)

    pred, recon, mu, logvar = vib_forward(x, eps, params)
    jax.block_until_ready((pred, recon, mu, logvar))

    # Exact-math check against a bf16-mirrored reference.
    pred_b, recon_b, mu_b, logvar_b = vib_forward_ref_bf16(x, eps, params)
    assert jnp.allclose(pred, pred_b, atol=1e-2, rtol=1e-2)
    assert jnp.allclose(recon, recon_b, atol=1e-2, rtol=1e-2)
    assert jnp.allclose(mu, mu_b, atol=1e-2, rtol=1e-2)
    assert jnp.allclose(logvar, logvar_b, atol=1e-2, rtol=1e-2)

    # Loose semantic check against the full-f32 reference (bf16 matmul error).
    pred_r, recon_r, mu_r, logvar_r = vib_forward_ref_f32(x, eps, params)
    assert jnp.allclose(pred, pred_r, atol=0.25, rtol=0.25)
    assert jnp.allclose(recon, recon_r, atol=0.25, rtol=0.25)
    assert jnp.allclose(mu, mu_r, atol=0.25, rtol=0.25)
    assert jnp.allclose(logvar, logvar_r, atol=0.25, rtol=0.25)

    print("KERNEL_OK")
</pallas_src>

<mosaic_0001>
module attributes {stable_mosaic.version = 11 : i64} {
  func.func @vib_forward_kernel(%arg0: i32, %arg1: memref<16x32xbf16, #tpu.memory_space<vmem>>, %arg2: memref<16x16xf32, #tpu.memory_space<vmem>>, %arg3: memref<32x64xbf16, #tpu.memory_space<vmem>>, %arg4: memref<1x64xf32, #tpu.memory_space<vmem>>, %arg5: memref<64x32xbf16, #tpu.memory_space<vmem>>, %arg6: memref<1x32xf32, #tpu.memory_space<vmem>>, %arg7: memref<16x40xbf16, #tpu.memory_space<vmem>>, %arg8: memref<1x40xf32, #tpu.memory_space<vmem>>, %arg9: memref<16x128xf32, #tpu.memory_space<vmem>>) attributes {dimension_semantics = [#tpu.dimension_semantics<parallel>], iteration_bounds = array<i64: 1>, scalar_prefetch = 0 : i64, scratch_operands = 0 : i64, tpu.core_type = #tpu.core_type<tc>, window_params = [{transform_indices = @transform_0, window_bounds = array<i64: 16, 32>}, {transform_indices = @transform_1, window_bounds = array<i64: 16, 16>}, {pipeline_mode = #tpu.pipeline_mode<synchronous>, transform_indices = @transform_2, window_bounds = array<i64: 32, 64>}, {pipeline_mode = #tpu.pipeline_mode<synchronous>, transform_indices = @transform_3, window_bounds = array<i64: 1, 64>}, {pipeline_mode = #tpu.pipeline_mode<synchronous>, transform_indices = @transform_4, window_bounds = array<i64: 64, 32>}, {pipeline_mode = #tpu.pipeline_mode<synchronous>, transform_indices = @transform_5, window_bounds = array<i64: 1, 32>}, {pipeline_mode = #tpu.pipeline_mode<synchronous>, transform_indices = @transform_6, window_bounds = array<i64: 16, 40>}, {pipeline_mode = #tpu.pipeline_mode<synchronous>, transform_indices = @transform_7, window_bounds = array<i64: 1, 40>}, {transform_indices = @transform_8, window_bounds = array<i64: 16, 128>}]} {
    %c0 = arith.constant 0 : index
    %c0_0 = arith.constant 0 : index
    %0 = vector.load %arg1[%c0, %c0_0] : memref<16x32xbf16, #tpu.memory_space<vmem>>, vector<16x32xbf16>
    %c0_1 = arith.constant 0 : index
    %c0_2 = arith.constant 0 : index
    %1 = vector.load %arg3[%c0_1, %c0_2] : memref<32x64xbf16, #tpu.memory_space<vmem>>, vector<32x64xbf16>
    %cst = arith.constant dense<0.000000e+00> : vector<16x64xf32>
    %2 = tpu.matmul %0, %1, %cst {dimension_numbers = #tpu.dot_dimension_numbers<[1], [0], [0], [1], [0, 0, 1, 1], [], []>} : vector<16x32xbf16>, vector<32x64xbf16>, vector<16x64xf32> -> vector<16x64xf32>
    %c0_3 = arith.constant 0 : index
    %c0_4 = arith.constant 0 : index
    %3 = vector.load %arg4[%c0_3, %c0_4] : memref<1x64xf32, #tpu.memory_space<vmem>>, vector<1x64xf32>
    %4 = vector.broadcast %3 : vector<1x64xf32> to vector<16x64xf32>
    %5 = arith.addf %2, %4 : vector<16x64xf32>
    %cst_5 = arith.constant 0.000000e+00 : f32
    %6 = vector.broadcast %cst_5 : f32 to vector<16x64xf32>
    %7 = arith.maximumf %5, %6 : vector<16x64xf32>
    %8 = arith.truncf %7 : vector<16x64xf32> to vector<16x64xbf16>
    %c0_6 = arith.constant 0 : index
    %c0_7 = arith.constant 0 : index
    %9 = vector.load %arg5[%c0_6, %c0_7] : memref<64x32xbf16, #tpu.memory_space<vmem>>, vector<64x32xbf16>
    %cst_8 = arith.constant dense<0.000000e+00> : vector<16x32xf32>
    %10 = tpu.matmul %8, %9, %cst_8 {dimension_numbers = #tpu.dot_dimension_numbers<[1], [0], [0], [1], [0, 0, 1, 1], [], []>} : vector<16x64xbf16>, vector<64x32xbf16>, vector<16x32xf32> -> vector<16x32xf32>
    %c0_9 = arith.constant 0 : index
    %c0_10 = arith.constant 0 : index
    %11 = vector.load %arg6[%c0_9, %c0_10] : memref<1x32xf32, #tpu.memory_space<vmem>>, vector<1x32xf32>
    %12 = vector.broadcast %11 : vector<1x32xf32> to vector<16x32xf32>
    %13 = arith.addf %10, %12 : vector<16x32xf32>
    %14 = vector.extract_strided_slice %13 {offsets = [0, 0], sizes = [16, 16], strides = [1, 1]} : vector<16x32xf32> to vector<16x16xf32>
    %15 = vector.extract_strided_slice %13 {offsets = [0, 16], sizes = [16, 16], strides = [1, 1]} : vector<16x32xf32> to vector<16x16xf32>
    %c0_11 = arith.constant 0 : index
    %c0_12 = arith.constant 0 : index
    %16 = vector.load %arg2[%c0_11, %c0_12] : memref<16x16xf32, #tpu.memory_space<vmem>>, vector<16x16xf32>
    %cst_13 = arith.constant 5.000000e-01 : f32
    %17 = vector.broadcast %cst_13 : f32 to vector<16x16xf32>
    %18 = arith.mulf %17, %15 : vector<16x16xf32>
    %19 = math.exp %18 : vector<16x16xf32>
    %20 = arith.mulf %16, %19 : vector<16x16xf32>
    %21 = arith.addf %14, %20 : vector<16x16xf32>
    %22 = arith.truncf %21 : vector<16x16xf32> to vector<16x16xbf16>
    %c0_14 = arith.constant 0 : index
    %c0_15 = arith.constant 0 : index
    %23 = vector.load %arg7[%c0_14, %c0_15] : memref<16x40xbf16, #tpu.memory_space<vmem>>, vector<16x40xbf16>
    %cst_16 = arith.constant dense<0.000000e+00> : vector<16x40xf32>
    %24 = tpu.matmul %22, %23, %cst_16 {dimension_numbers = #tpu.dot_dimension_numbers<[1], [0], [0], [1], [0, 0, 1, 1], [], []>} : vector<16x16xbf16>, vector<16x40xbf16>, vector<16x40xf32> -> vector<16x40xf32>
    %c0_17 = arith.constant 0 : index
    %c0_18 = arith.constant 0 : index
    %25 = vector.load %arg8[%c0_17, %c0_18] : memref<1x40xf32, #tpu.memory_space<vmem>>, vector<1x40xf32>
    %26 = vector.broadcast %25 : vector<1x40xf32> to vector<16x40xf32>
    %27 = arith.addf %24, %26 : vector<16x40xf32>
    %28 = tpu.iota {dimensions = array<i32: 1>} : vector<16x40xi32>
    %c8_i32 = arith.constant 8 : i32
    %29 = vector.broadcast %c8_i32 : i32 to vector<16x40xi32>
    %30 = arith.cmpi sge, %28, %29 : vector<16x40xi32>
    %31 = arith.negf %27 : vector<16x40xf32>
    %32 = math.exp %31 : vector<16x40xf32>
    %cst_19 = arith.constant 1.000000e+00 : f32
    %33 = vector.broadcast %cst_19 : f32 to vector<16x40xf32>
    %34 = arith.addf %33, %32 : vector<16x40xf32>
    %35 = arith.divf %33, %34 : vector<16x40xf32>
    %36 = arith.select %30, %35, %27 : vector<16x40xi1>, vector<16x40xf32>
    %cst_20 = arith.constant 0.000000e+00 : f32
    %37 = vector.broadcast %cst_20 : f32 to vector<16x56xf32>
    %38 = tpu.concatenate %36, %13, %37 in 1 : vector<16x40xf32>, vector<16x32xf32>, vector<16x56xf32> -> vector<16x128xf32>
    %c0_21 = arith.constant 0 : index
    %c0_22 = arith.constant 0 : index
    %39 = vector.load %arg9[%c0_21, %c0_22] : memref<16x128xf32, #tpu.memory_space<vmem>>, vector<16x128xf32>
    tpu.vector_store %arg9[%c0_21, %c0_22], %38 {strides = array<i32>} : memref<16x128xf32, #tpu.memory_space<vmem>>, vector<16x128xf32>,
    return
  }
  func.func @transform_0(%arg0: i32) -> (i32, i32) {
    %c0_i32 = arith.constant 0 : i32
    %c0_i32_0 = arith.constant 0 : i32
    return %arg0, %c0_i32 : i32, i32
  }
  func.func @transform_1(%arg0: i32) -> (i32, i32) {
    %c0_i32 = arith.constant 0 : i32
    %c0_i32_0 = arith.constant 0 : i32
    return %arg0, %c0_i32 : i32, i32
  }
  func.func @transform_2(%arg0: i32) -> (i32, i32) {
    %c0_i32 = arith.constant 0 : i32
    %c0_i32_0 = arith.constant 0 : i32
    %c0_i32_1 = arith.constant 0 : i32
    return %c0_i32, %c0_i32_0 : i32, i32
  }
  func.func @transform_3(%arg0: i32) -> (i32, i32) {
    %c0_i32 = arith.constant 0 : i32
    %c0_i32_0 = arith.constant 0 : i32
    %c0_i32_1 = arith.constant 0 : i32
    return %c0_i32, %c0_i32_0 : i32, i32
  }
  func.func @transform_4(%arg0: i32) -> (i32, i32) {
    %c0_i32 = arith.constant 0 : i32
    %c0_i32_0 = arith.constant 0 : i32
    %c0_i32_1 = arith.constant 0 : i32
    return %c0_i32, %c0_i32_0 : i32, i32
  }
  func.func @transform_5(%arg0: i32) -> (i32, i32) {
    %c0_i32 = arith.constant 0 : i32
    %c0_i32_0 = arith.constant 0 : i32
    %c0_i32_1 = arith.constant 0 : i32
    return %c0_i32, %c0_i32_0 : i32, i32
  }
  func.func @transform_6(%arg0: i32) -> (i32, i32) {
    %c0_i32 = arith.constant 0 : i32
    %c0_i32_0 = arith.constant 0 : i32
    %c0_i32_1 = arith.constant 0 : i32
    return %c0_i32, %c0_i32_0 : i32, i32
  }
  func.func @transform_7(%arg0: i32) -> (i32, i32) {
    %c0_i32 = arith.constant 0 : i32
    %c0_i32_0 = arith.constant 0 : i32
    %c0_i32_1 = arith.constant 0 : i32
    return %c0_i32, %c0_i32_0 : i32, i32
  }
  func.func @transform_8(%arg0: i32) -> (i32, i32) {
    %c0_i32 = arith.constant 0 : i32
    %c0_i32_0 = arith.constant 0 : i32
    return %arg0, %c0_i32 : i32, i32
  }
}

</mosaic_0001>

<bundles_post_ra>
// kernel: tpu_custom_call.1
= control target key start
LH: loop header
LB: loop body
LE: loop exit
PB: predicated region body
PF: predicated region fallthrough
CT: control target
= control target key end

     0   :  { %s450_s0 = inlined_call_operand.vmem [shape: bf16[16,32], index: 0, kind: input, shape index: {}]   ;;  %s451_s1 = inlined_call_operand.vmem [shape: f32[16,16], index: 1, kind: input, shape index: {}]   ;;  %s452_s2 = inlined_call_operand.vmem [shape: bf16[32,64], index: 2, kind: input, shape index: {}]   ;;  %s453_s3 = inlined_call_operand.vmem [shape: f32[1,64], index: 3, kind: input, shape index: {}]   ;;  %s454_s4 = inlined_call_operand.vmem [shape: bf16[64,32], index: 4, kind: input, shape index: {}]   ;;  %s455_s5 = inlined_call_operand.vmem [shape: f32[1,32], index: 5, kind: input, shape index: {}]   ;;  %s456_s6 = inlined_call_operand.vmem [shape: bf16[16,40], index: 6, kind: input, shape index: {}]   ;;  %s457_s7 = inlined_call_operand.vmem [shape: f32[1,40], index: 7, kind: input, shape index: {}]   ;;  %s458_s8 = inlined_call_operand.hbm [shape: f32[16,128], index: 8, kind: output, shape index: {}]  }
   0x1   :  { %v300_v0 = vld [vmem:[%s452_s2 + $0x8] sm:$0xff]  ;;  %v299_v1 = vld [vmem:[%s452_s2] sm:$0xff] }
   0x2   :  { %68 = vmatpush.bf16.msra.mxu0 %v300_v0 }
   0x3   :  { %13 = vsyncpa [#allocation3], 0  ;;  %v298_v2 = vld [vmem:[%s450_s0] sm:$0xff]  ;;  %vm58_vm0 = vcmask 261120   ;;  %v304_v3 = vld [vmem:[%s454_s4 + $0x18] sm:$0xff]  ;;  %vm115_vm1 = vcmask 523264   ;;  %v184_v47 = vlaneseq }
   0x4   :  { %123 = vmatpush.bf16.msra.mxu1 %v304_v3  ;;  %v303_v4 = vld [vmem:[%s454_s4 + $0x10] sm:$0xff]  ;;  %v302_v5 = vld [vmem:[%s454_s4 + $0x8] sm:$0xff]  ;;  %v301_v6 = vld [vmem:[%s454_s4] sm:$0xff]  ;;  %s352_s4 = smov 40   ;;  %vm166_vm2 = vcmask 130048   ;;  %vm235_vm8 = vcmask 326656  }
   0x5   :  { %v311_v8 = vld [vmem:[%s453_s3] ss:$0 sm:$0xff]  ;;  %s353_s3 = smov 112   ;;  %v134_v29 = vld [vmem:[%s451_s1 + $0x8] sm:$0xff]  ;;  %v185_v51 = vand.u32 127, %v184_v47  ;;  %vm238_vm9 = vcmask 588800  }
   0x6   :  { %69 = vmatpush.bf16.msra.mxu0 %v299_v1  ;;  %v312_v15 = vld [vmem:[%s455_s5] ss:$0 sm:$0xff]  ;;  %s249_s29 = sshll.u32 %s458_s8, 4  ;;  %s355_s30 = smov 128   ;;  %s250_s29 = int_to_ptr.hbm [resolvable:$true] %s249_s29 }
   0x7   :  { %v305_v26 = vld [vmem:[%s456_s6] sm:$0xff]  ;;  %vm186_vm5 = vcmp.ge.s32.totalorder %v185_v51, 8  ;;  %s356_s9 = smov 8  }
   0x8   :  { %124 = vmatpush.bf16.msra.mxu1 %v303_v4  ;;  %177 = vmatpush.bf16.msra.mxu2 %v305_v26  ;;  %v133_v28 = vld [vmem:[%s451_s1] sm:$0xff]  ;;  %s354_s1 = smov [#allocation2]  }
   0x9   :  { %273 = vmatmul.msk.bf16.vlgmr.msra.gmra.mxu0 %vm58_vm0, %v298_v2  ;;  %v313_v36 = vld [vmem:[%s457_s7] ss:$0 sm:$0xff]  ;;  %s247_s7 = sshll.u32 %s354_s1, 4  ;;  %s248_s7 = int_to_ptr.vmem [resolvable:$true] %s247_s7 }
   0xc   :  { %125 = vmatpush.bf16.msra.mxu1 %v302_v5 }
  0x10   :  { %126 = vmatpush.bf16.msra.mxu1 %v301_v6 }
  0x86   :  { %v71_v7 = vpop.f32.mrf.mxu0 }
  0x87   :  { %v72_v9 = vadd.f32 %v311_v8, %v71_v7 }
  0x89   :  { %v76_v12 = vmax.f32 %v72_v9, 0.0 }
  0x8e   :  { %v73_v10 = vpop.f32.mrf.mxu0 }
  0x8f   :  { %v74_v11 = vadd.f32 %v311_v8, %v73_v10 }
  0x91   :  { %v77_v13 = vmax.f32 %v74_v11, 0.0 }
  0x93   :  { %v78_v14 = vpack.c.bf16 %v77_v13, %v76_v12 }
  0x95   :  { %290 = vmatmul.msk.bf16.vlgmr.msra.gmra.mxu1 %vm115_vm1, %v78_v14 }
 0x112   :  { %v128_v16 = vpop.f32.mrf.mxu1 }
 0x113   :  { %v129_v17 = vadd.f32 %v312_v15, %v128_v16 }
 0x115   :  { %v135_v18 = vmul.f32 0.5, %v129_v17  ;;  %229 = vrot.lane.b32.xlu1 %v129_v17, %s352_s4 }
 0x117   :  { %v137_v19 = vmul.f32 1.442695, %v135_v18 }
 0x119   :  { %314 = vpow2.f32 %v137_v19 }
 0x11a   :  { %v130_v20 = vpop.f32.mrf.mxu1 }
 0x11b   :  { %v131_v21 = vadd.f32 %v312_v15, %v130_v20 }
 0x11d   :  { %v136_v22 = vmul.f32 0.5, %v131_v21  ;;  %231 = vrot.lane.b32.xlu1 %v131_v21, %s352_s4 }
 0x11f   :  { %v315_v23 = vpop.eup %314  ;;  %v139_v24 = vmul.f32 1.442695, %v136_v22 }
 0x120   :  { %143 = vrot.lane.b32.xlu0 %v315_v23, %s353_s3 }
 0x121   :  { %316 = vpow2.f32 %v139_v24 }
 0x127   :  { %v317_v25 = vpop.eup %316 }
 0x128   :  { %145 = vrot.lane.b32.xlu0 %v317_v25, %s353_s3 }
 0x187   :  { %v230_v58 = vpop.permute.xlu1 %229 }
 0x18f   :  { %v232_v9 = vpop.permute.xlu1 %231 }
 0x192   :  { %v144_v27 = vpop.permute.xlu0 %143 }
 0x193   :  { %v149_v30 = vmul.f32 %v144_v27, %v133_v28 }
 0x195   :  { %v151_v33 = vadd.f32 %v149_v30, %v129_v17 }
 0x19a   :  { %v146_v31 = vpop.permute.xlu0 %145 }
 0x19b   :  { %v150_v32 = vmul.f32 %v146_v31, %v134_v29 }
 0x19d   :  { %v152_v34 = vadd.f32 %v150_v32, %v131_v21 }
 0x19f   :  { %v153_v35 = vpack.c.bf16 %v152_v34, %v151_v33 }
 0x1a1   :  { %295 = vmatmul.msk.bf16.vlgmr.msra.gmra.mxu2 %vm166_vm2, %v153_v35 }
 0x224   :  { %v179_v37 = vpop.f32.mrf.mxu2 }
 0x225   :  { %v180_v38 = vadd.f32 %v313_v36, %v179_v37 }
 0x227   :  { %v296_v39 = vmul.f32 -1.442695, %v180_v38 }
 0x229   :  { %318 = vpow2.f32 %v296_v39 }
 0x22c   :  { %v181_v40 = vpop.f32.mrf.mxu2 }
 0x22d   :  { %v182_v41 = vadd.f32 %v313_v36, %v181_v40 }
 0x22f   :  { %v319_v42 = vpop.eup %318  ;;  %v297_v43 = vmul.f32 -1.442695, %v182_v41 }
 0x230   :  { %v193_v44 = vadd.f32 1.0, %v319_v42 }
 0x231   :  { %320 = vpow2.f32 %v297_v43 }
 0x232   :  { %322 = vrcp.f32 %v193_v44  ;;  %v206_v52 = vand.u32 2147483648, %v193_v44  ;;  %v204_v54 = vand.u32 2147483647, %v193_v44  ;;  %vm200_vm4 = vweird.f32 %v193_v44 }
 0x234   :  { %v207_v57 = vor.u32 1.1754944e-38, %v206_v52  ;;  %vm205_vm7 = vcmp.eq.f32.partialorder %v204_v54, 8.507059e+37 }
 0x237   :  { %v321_v45 = vpop.eup %320 }
 0x238   :  { %v323_v46 = vpop.eup %322  ;;  %v194_v48 = vadd.f32 1.0, %v321_v45 }
 0x239   :  { %v196_v49 = vmul.f32 %v323_v46, %v193_v44  ;;  %vm201_vm3 = vweird.f32 %v323_v46 }
 0x23a   :  { %324 = vrcp.f32 %v194_v48  ;;  %vm202_vm6 = vmor %vm200_vm4, %vm201_vm3  ;;  %v221_v1 = vand.u32 2147483648, %v194_v48  ;;  %v219_v4 = vand.u32 2147483647, %v194_v48  ;;  %vm215_vm11 = vweird.f32 %v194_v48 }
 0x23b   :  { %v197_v50 = vsub.f32 1.0, %v196_v49 }
 0x23c   :  { %v222_v6 = vor.u32 1.1754944e-38, %v221_v1  ;;  %vm220_vm13 = vcmp.eq.f32.partialorder %v219_v4, 8.507059e+37 }
 0x23d   :  { %v198_v53 = vmul.f32 %v323_v46, %v197_v50 }
 0x23f   :  { %v199_v55 = vadd.f32 %v323_v46, %v198_v53 }
 0x240   :  { %v325_v56 = vpop.eup %324 }
 0x241   :  { %v203_v59 = vsel %vm202_vm6, %v323_v46, %v199_v55  ;;  %v211_v60 = vmul.f32 %v325_v56, %v194_v48  ;;  %vm216_vm10 = vweird.f32 %v325_v56 }
 0x242   :  { %v208_v61 = vsel %vm205_vm7, %v207_v57, %v203_v59  ;;  %vm217_vm12 = vmor %vm215_vm11, %vm216_vm10 }
 0x243   :  { %v225_v62 = vsel %vm186_vm5, %v208_v61, %v180_v38  ;;  %v212_v63 = vsub.f32 1.0, %v211_v60 }
 0x244   :  { %v236_v0 = vsel %vm235_vm8, %v225_v62, %v230_v58 }
 0x245   :  { %v239_v2 = vsel %vm238_vm9, %v236_v0, 0.0  ;;  %v213_v3 = vmul.f32 %v325_v56, %v212_v63 }
 0x246   :  { %241 = vst [vmem:[#allocation2] sm:$0xff] %v239_v2 }
 0x247   :  { %v214_v5 = vadd.f32 %v325_v56, %v213_v3 }
 0x249   :  { %v218_v7 = vsel %vm217_vm12, %v325_v56, %v214_v5 }
 0x24a   :  { %v223_v8 = vsel %vm220_vm13, %v222_v6, %v218_v7 }
 0x24b   :  { %v226_v10 = vsel %vm186_vm5, %v223_v8, %v182_v41 }
 0x24c   :  { %v237_v11 = vsel %vm235_vm8, %v226_v10, %v232_v9 }
 0x24d   :  { %v240_v12 = vsel %vm238_vm9, %v237_v11, 0.0 }
 0x24e   :  { %242 = vst [vmem:[#allocation2 + $0x8] sm:$0xff] %v240_v12 }
 0x24f   :  { %255 = dma.vmem_to_hbm [thread:$0]  %s248_s7, 256, %s250_s29, [#allocation3], %s355_s30, %s355_s30, %s356_s9  }
 0x250   :  { %350 = dma.done.wait [#allocation3], 256  }
 0x251   :  { %351 = vsyncadd [#allocation3], 4294967040 }
 0x252   :  { %260 = vsyncpa [#allocation3], 1 }

</bundles_post_ra>
